<compile_context>
chip_gen: v7x
topology: tpu7x:2x2x1
jax: 0.10.0
libtpu: 0.0.40
codegen_flags: <defaults>
</compile_context>

<pallas_src>
import functools
import math

import jax
import jax.numpy as jnp
from jax.experimental import pallas as pl
from jax.experimental.pallas import tpu as pltpu


ROW_W = 512              # lane width presented to the kernel (multiple of 128)
DEFAULT_TILE_R = 1024    # rows per grid step: 1024*512*4B = 2 MiB per input tile
DEFAULT_MIN_PALLAS_ELEMS = 1 << 20   # below this, fused XLA beats any kernel


def _round_up(x, m):
    return ((x + m - 1) // m) * m


def _loss_kernel(est_ref, truth_ref, out_ref, acc_ref, *, inv_n, two_pi):
    # est_ref/truth_ref: (tile_r, ROW_W) f32 tiles in VMEM (auto-pipelined)
    # out_ref:           (1, 1) f32 in SMEM (final scalar loss)
    # acc_ref:           (8, ROW_W) f32 VMEM partial-sum accumulator
    i = pl.program_id(0)

    @pl.when(i == 0)
    def _():
        acc_ref[...] = jnp.zeros_like(acc_ref)

    # cos is even -> no abs needed; zero-padded tail contributes 1-cos(0)=0.
    diff = truth_ref[...] - est_ref[...]
    dist = 1.0 - jnp.cos(two_pi * diff)                    # (tile_r, ROW_W)

    tile_r, row_w = dist.shape
    # Cheap per-step reduction: fold rows in groups of 8 onto the vreg-shaped
    # accumulator (pure VPU adds; no XLU tree on the per-iteration path).
    acc_ref[...] += jnp.sum(dist.reshape(tile_r // 8, 8, row_w), axis=0)

    @pl.when(i == pl.num_programs(0) - 1)
    def _():
        # Single cross-lane/cross-sublane reduction, exactly once.
        out_ref[0, 0] = jnp.sum(acc_ref[...]) * inv_n


def _loss_xla(est, truth):
    diff = truth.astype(jnp.float32) - est.astype(jnp.float32)
    return jnp.mean(1.0 - jnp.cos(2.0 * math.pi * diff))


def custom_loss(est, truth, *, tile_r=DEFAULT_TILE_R,
                min_pallas_elems=DEFAULT_MIN_PALLAS_ELEMS):
    """Est, Truth: arrays whose per-sample flattened size is 2500 (e.g. (B,1,50,50))."""
    b = est.shape[0]
    n = math.prod(est.shape)
    assert n // b == 2500, "module hardcodes ones((B, 2500))"

    if n < min_pallas_elems:
        # Tiny problems: a single fused XLA expression beats kernel launch cost.
        return _loss_xla(est, truth)

    est_flat = est.reshape(-1).astype(jnp.float32)
    truth_flat = truth.reshape(-1).astype(jnp.float32)

    # Lane-dense, (8,128)-aligned slab: pad flat length to rows_padded*ROW_W.
    rows = (n + ROW_W - 1) // ROW_W
    tile_r_eff = min(int(tile_r), _round_up(rows, 8))
    tile_r_eff = _round_up(tile_r_eff, 8)
    rows_padded = _round_up(rows, tile_r_eff)
    n_padded = rows_padded * ROW_W

    pad = n_padded - n
    if pad:
        # Zero padding is exact: 1 - cos(2*pi*0) == 0; divisor stays true n.
        est_flat = jnp.pad(est_flat, (0, pad))
        truth_flat = jnp.pad(truth_flat, (0, pad))
    est2 = est_flat.reshape(rows_padded, ROW_W)
    truth2 = truth_flat.reshape(rows_padded, ROW_W)

    num_tiles = rows_padded // tile_r_eff

    kernel = functools.partial(_loss_kernel,
                               inv_n=1.0 / float(n),
                               two_pi=2.0 * math.pi)

    loss = pl.pallas_call(
        kernel,
        out_shape=jax.ShapeDtypeStruct((1, 1), jnp.float32),
        grid_spec=pltpu.PrefetchScalarGridSpec(
            num_scalar_prefetch=0,
            grid=(num_tiles,),
            in_specs=[
                pl.BlockSpec((tile_r_eff, ROW_W), lambda i: (i, 0)),
                pl.BlockSpec((tile_r_eff, ROW_W), lambda i: (i, 0)),
            ],
            # Same (1,1) block every step -> resident scalar accumulator output.
            out_specs=pl.BlockSpec((1, 1), lambda i: (0, 0),
                                   memory_space=pltpu.SMEM),
            scratch_shapes=[pltpu.VMEM((8, ROW_W), jnp.float32)],
        ),
        compiler_params=pltpu.CompilerParams(
            dimension_semantics=("arbitrary",)),   # reduction axis
    )(est2, truth2)
    return loss[0, 0]


if __name__ == "__main__":
    key = jax.random.PRNGKey(0)
    k1, k2 = jax.random.split(key)

    # Small, module-consistent shape: B=2, C=1, H=W=50 -> flatten(1) == 2500.
    est_s = jax.random.uniform(k1, (2, 1, 50, 50), dtype=jnp.float32)
    truth_s = jax.random.uniform(k2, (2, 1, 50, 50), dtype=jnp.float32)

    # Force the Pallas path even at this tiny size so the kernel is exercised.
    loss_s = custom_loss(est_s, truth_s, min_pallas_elems=0)
    jax.block_until_ready(loss_s)
    ref_s = _loss_xla(est_s, truth_s)
    assert jnp.allclose(loss_s, ref_s, atol=1e-5, rtol=1e-5), (loss_s, ref_s)

    # Moderately larger batch + small tile to exercise the multi-step gridded
    # accumulator path (grid > 1, init/accumulate/finalize).
    k3, k4 = jax.random.split(jax.random.PRNGKey(1))
    est_l = jax.random.uniform(k3, (128, 1, 50, 50), dtype=jnp.float32)
    truth_l = jax.random.uniform(k4, (128, 1, 50, 50), dtype=jnp.float32)
    loss_l = custom_loss(est_l, truth_l, tile_r=128, min_pallas_elems=0)
    jax.block_until_ready(loss_l)
    ref_l = _loss_xla(est_l, truth_l)
    assert jnp.allclose(loss_l, ref_l, atol=1e-5, rtol=1e-5), (loss_l, ref_l)

    # Default gate: tiny problems fall back to fused XLA.
    loss_gate = custom_loss(est_s, truth_s)
    jax.block_until_ready(loss_gate)
    assert jnp.allclose(loss_gate, ref_s, atol=1e-5, rtol=1e-5)

    print("KERNEL_OK")
</pallas_src>

<mosaic_0001>
module attributes {stable_mosaic.version = 11 : i64} {
  func.func @_loss_kernel(%arg0: i32, %arg1: memref<16x512xf32, #tpu.memory_space<vmem>>, %arg2: memref<16x512xf32, #tpu.memory_space<vmem>>, %arg3: memref<1x1xf32, #tpu.memory_space<smem>>, %arg4: memref<8x512xf32, #tpu.memory_space<vmem>>) attributes {dimension_semantics = [#tpu.dimension_semantics<arbitrary>], iteration_bounds = array<i64: 1>, scalar_prefetch = 0 : i64, scratch_operands = 1 : i64, tpu.core_type = #tpu.core_type<tc>, window_params = [{transform_indices = @transform_0, window_bounds = array<i64: 16, 512>}, {transform_indices = @transform_1, window_bounds = array<i64: 16, 512>}, {transform_indices = @transform_2, window_bounds = array<i64: 1, 1>}]} {
    %c0_i32 = arith.constant 0 : i32
    %0 = arith.cmpi eq, %arg0, %c0_i32 : i32
    %1 = arith.extui %0 : i1 to i32
    %c0_i32_0 = arith.constant 0 : i32
    %2 = arith.cmpi ne, %1, %c0_i32_0 : i32
    scf.if %2 {
      %cst_12 = arith.constant 0.000000e+00 : f32
      %19 = vector.broadcast %cst_12 : f32 to vector<8x512xf32>
      %c0_13 = arith.constant 0 : index
      %c0_14 = arith.constant 0 : index
      %20 = vector.load %arg4[%c0_13, %c0_14] : memref<8x512xf32, #tpu.memory_space<vmem>>, vector<8x512xf32>
      tpu.vector_store %arg4[%c0_13, %c0_14], %19 {strides = array<i32>} : memref<8x512xf32, #tpu.memory_space<vmem>>, vector<8x512xf32>,
    } else {
    }
    %c0 = arith.constant 0 : index
    %c0_1 = arith.constant 0 : index
    %3 = vector.load %arg2[%c0, %c0_1] : memref<16x512xf32, #tpu.memory_space<vmem>>, vector<16x512xf32>
    %c0_2 = arith.constant 0 : index
    %c0_3 = arith.constant 0 : index
    %4 = vector.load %arg1[%c0_2, %c0_3] : memref<16x512xf32, #tpu.memory_space<vmem>>, vector<16x512xf32>
    %5 = arith.subf %3, %4 : vector<16x512xf32>
    %cst = arith.constant 6.28318548 : f32
    %6 = vector.broadcast %cst : f32 to vector<16x512xf32>
    %7 = arith.mulf %6, %5 : vector<16x512xf32>
    %8 = math.cos %7 : vector<16x512xf32>
    %cst_4 = arith.constant 1.000000e+00 : f32
    %9 = vector.broadcast %cst_4 : f32 to vector<16x512xf32>
    %10 = arith.subf %9, %8 : vector<16x512xf32>
    %c0_5 = arith.constant 0 : index
    %c0_6 = arith.constant 0 : index
    %11 = vector.load %arg4[%c0_5, %c0_6] : memref<8x512xf32, #tpu.memory_space<vmem>>, vector<8x512xf32>
    %12 = vector.shape_cast %10 : vector<16x512xf32> to vector<2x8x512xf32>
    %cst_7 = arith.constant dense<0.000000e+00> : vector<8x512xf32>
    %13 = vector.multi_reduction <add>, %12, %cst_7 [0] : vector<2x8x512xf32> to vector<8x512xf32>
    %14 = arith.addf %11, %13 : vector<8x512xf32>
    %c0_8 = arith.constant 0 : index
    %c0_9 = arith.constant 0 : index
    %15 = vector.load %arg4[%c0_8, %c0_9] : memref<8x512xf32, #tpu.memory_space<vmem>>, vector<8x512xf32>
    tpu.vector_store %arg4[%c0_8, %c0_9], %14 {strides = array<i32>} : memref<8x512xf32, #tpu.memory_space<vmem>>, vector<8x512xf32>,
    %c0_i32_10 = arith.constant 0 : i32
    %16 = arith.cmpi eq, %arg0, %c0_i32_10 : i32
    %17 = arith.extui %16 : i1 to i32
    %c0_i32_11 = arith.constant 0 : i32
    %18 = arith.cmpi ne, %17, %c0_i32_11 : i32
    scf.if %18 {
      %c0_12 = arith.constant 0 : index
      %c0_13 = arith.constant 0 : index
      %19 = vector.load %arg4[%c0_12, %c0_13] : memref<8x512xf32, #tpu.memory_space<vmem>>, vector<8x512xf32>
      %20 = vector.shape_cast %19 : vector<8x512xf32> to vector<1x8x512xf32>
      %cst_14 = arith.constant dense<0.000000e+00> : vector<1xf32>
      %21 = vector.multi_reduction <add>, %20, %cst_14 [1, 2] : vector<1x8x512xf32> to vector<1xf32>
      %22 = vector.shape_cast %21 : vector<1xf32> to vector<1x1x1xf32>
      %23 = vector.extract %22[0, 0, 0] : f32 from vector<1x1x1xf32>
      %cst_15 = arith.constant 2.000000e-04 : f32
      %24 = arith.mulf %23, %cst_15 : f32
      %c0_16 = arith.constant 0 : index
      %c0_17 = arith.constant 0 : index
      %25 = memref.load %arg3[%c0_16, %c0_17] : memref<1x1xf32, #tpu.memory_space<smem>>
      memref.store %24, %arg3[%c0_16, %c0_17] : memref<1x1xf32, #tpu.memory_space<smem>>
    } else {
    }
    return
  }
  func.func @transform_0(%arg0: i32) -> (i32, i32) {
    %c0_i32 = arith.constant 0 : i32
    %c0_i32_0 = arith.constant 0 : i32
    return %arg0, %c0_i32 : i32, i32
  }
  func.func @transform_1(%arg0: i32) -> (i32, i32) {
    %c0_i32 = arith.constant 0 : i32
    %c0_i32_0 = arith.constant 0 : i32
    return %arg0, %c0_i32 : i32, i32
  }
  func.func @transform_2(%arg0: i32) -> (i32, i32) {
    %c0_i32 = arith.constant 0 : i32
    %c0_i32_0 = arith.constant 0 : i32
    %c0_i32_1 = arith.constant 0 : i32
    return %c0_i32, %c0_i32_0 : i32, i32
  }
}

</mosaic_0001>

<bundles_post_ra>
// kernel: tpu_custom_call.1
= control target key start
LH: loop header
LB: loop body
LE: loop exit
PB: predicated region body
PF: predicated region fallthrough
CT: control target
= control target key end

     0   :  { %7 = vsyncpa [#allocation4], 0  ;;  %s1969_s0 = inlined_call_operand.hbm [shape: f32[16,512], index: 0, kind: input, shape index: {}]   ;;  %s1970_s1 = inlined_call_operand.hbm [shape: f32[16,512], index: 1, kind: input, shape index: {}]   ;;  %s1971_s2 = inlined_call_operand.hbm [shape: f32[1,1], index: 2, kind: output, shape index: {}]  }
   0x1   :  { %8 = vsyncpa [#allocation7], 0 }
   0x2   :  { %9 = vsyncpa [#allocation5], 0  ;;  %s1134_s9 = smov [#allocation3]   ;;  %s1074_s13 = scalar_lea.hbm %s1969_s0, 1024 }
   0x3   :  { %s15_s10 = sshll.u32 %s1134_s9, 4  ;;  %p1075_p0 = scmp.ne.s32.totalorder %s1969_s0, %s1074_s13  ;;  %s16_s10 = int_to_ptr.vmem [resolvable:$true] %s15_s10 }
   0x4   :  { %p1078_p1 = scmp.lt.u32.totalorder %s1074_s13, %s1969_s0 }
   0x6   :  { %p1080_p2 = pnand %p1078_p1, %p1075_p0 }
   0x8   :  { %1083 = shalt.err (!%p1080_p2)
}
   0x9   :  { %s1084_s18 = scalar_lea.vmem %s16_s10, 1024  ;;  %p1089_p4 = scmp.lt.s32.totalorder %s16_s10, %s16_s10 }
   0xa   :  { %p1085_p3 = scmp.ne.s32.totalorder %s16_s10, %s1084_s18  ;;  %p1090_p5 = scmp.lt.s32.totalorder %s1084_s18, %s1084_s18 }
   0xc   :  { %p1091_p6 = por %p1090_p5, %p1089_p4 }
   0xe   :  { %p1092_p7 = pnand %p1091_p6, %p1085_p3 }
  0x10   :  { %1095 = shalt.err (!%p1092_p7)
}
  0x11   :  { %s1135_s19 = smov 512   ;;  %s1136_s20 = smov 32  }
  0x12   :  { %21 = dma.hbm_to_vmem [thread:$0]  %s1969_s0, 1024, %s16_s10, [#allocation4], %s1135_s19, %s1135_s19, %s1136_s20  }
  0x13   :  { %s1137_s23 = smov [#allocation6]   ;;  %s1096_s27 = scalar_lea.hbm %s1970_s1, 1024 }
  0x14   :  { %s27_s24 = sshll.u32 %s1137_s23, 4  ;;  %p1097_p8 = scmp.ne.s32.totalorder %s1970_s1, %s1096_s27  ;;  %s28_s24 = int_to_ptr.vmem [resolvable:$true] %s27_s24 }
  0x15   :  { %p1100_p9 = scmp.lt.u32.totalorder %s1096_s27, %s1970_s1 }
  0x17   :  { %p1102_p10 = pnand %p1100_p9, %p1097_p8 }
  0x19   :  { %1105 = shalt.err (!%p1102_p10)
}
  0x1a   :  { %s1106_s4 = scalar_lea.vmem %s28_s24, 1024  ;;  %p1111_p12 = scmp.lt.s32.totalorder %s28_s24, %s28_s24 }
  0x1b   :  { %p1107_p11 = scmp.ne.s32.totalorder %s28_s24, %s1106_s4  ;;  %p1112_p13 = scmp.lt.s32.totalorder %s1106_s4, %s1106_s4 }
  0x1d   :  { %p1113_p0 = por %p1112_p13, %p1111_p12 }
  0x1f   :  { %p1114_p1 = pnand %p1113_p0, %p1107_p11 }
  0x21   :  { %1117 = shalt.err (!%p1114_p1)
}
  0x22   :  { %33 = dma.hbm_to_vmem [thread:$0]  %s1970_s1, 1024, %s28_s24, [#allocation7], %s1135_s19, %s1135_s19, %s1136_s20  }
  0x23   :  { %1128 = dma.done.wait [#allocation4], 1024  }
  0x24   :  { %1129 = vsyncadd [#allocation4], 4294966272 }
  0x25   :  { %1130 = dma.done.wait [#allocation7], 1024  }
  0x26   :  { %1131 = vsyncadd [#allocation7], 4294966272  ;;  %v48_v0 = vld [vmem:[#allocation6] sm:$0xff]  ;;  %v49_v1 = vld [vmem:[#allocation6 + $0x8] sm:$0xff]  ;;  %v1138_v20 = vmov 2102212464  }
  0x27   :  { %v56_v2 = vld [vmem:[#allocation3] sm:$0xff]  ;;  %v57_v3 = vld [vmem:[#allocation3 + $0x8] sm:$0xff]  ;;  %v50_v22 = vld [vmem:[#allocation6 + $0x10] sm:$0xff]  ;;  %v1139_v25 = vmov 920167782   ;;  %s1118_s9 = scalar_lea.hbm %s1971_s2, 16 }
  0x28   :  { %v64_v4 = vsub.f32 %v48_v0, %v56_v2  ;;  %v65_v5 = vsub.f32 %v49_v1, %v57_v3  ;;  %v58_v23 = vld [vmem:[#allocation3 + $0x10] sm:$0xff]  ;;  %v1140_v28 = vmov 1326507024   ;;  %v1141_v30 = vmov 683565275   ;;  %p1119_p2 = scmp.ne.s32.totalorder %s1971_s2, %s1118_s9  ;;  %p1122_p3 = scmp.lt.u32.totalorder %s1118_s9, %s1971_s2 }
  0x29   :  { %v1142_v32 = vmov 2475754826   ;;  %v1143_v35 = vmov 2131351028   ;;  %v66_v39 = vsub.f32 %v50_v22, %v58_v23 }
  0x2a   :  { %v1184_v6 = vmul.f32 6.2831855, %v64_v4  ;;  %v1186_v7 = vmul.f32 6.2831855, %v65_v5  ;;  %p1124_p4 = pnand %p1122_p3, %p1119_p2 }
  0x2b   :  { %v1206_v47 = vmul.f32 6.2831855, %v66_v39 }
  0x2c   :  { %v83_v8 = vand.u32 2139095040, %v1184_v6  ;;  %v186_v9 = vand.u32 2139095040, %v1186_v7  ;;  %v80_v19 = vand.u32 2147483647, %v1184_v6  ;;  %v1975_v61 = vand.u32 2147483647, %v1186_v7 }
  0x2d   :  { %v289_v56 = vand.u32 2139095040, %v1206_v47 }
  0x2e   :  { %v84_v10 = vshrl.u32 %v83_v8, 23  ;;  %v187_v12 = vshrl.u32 %v186_v9, 23  ;;  %v87_v41 = vand.u32 8388607, %v80_v19 }
  0x2f   :  { %v290_v1 = vshrl.u32 %v289_v56, 23 }
  0x30   :  { %v965_v11 = vadd.s32 4294967169, %v84_v10  ;;  %v969_v14 = vadd.s32 4294967169, %v187_v12  ;;  %v88_v49 = vor.u32 8388608, %v87_v41 }
  0x32   :  { %v90_v13 = vadd.s32 1, %v965_v11  ;;  %v193_v18 = vadd.s32 1, %v969_v14  ;;  %v128_v57 = vshll.u32 %v88_v49, 8  ;;  %v51_v14 = vld [vmem:[#allocation6 + $0x18] sm:$0xff] }
  0x34   :  { %vm91_vm0 = vcmp.gt.s32.totalorder %v90_v13, 0  ;;  %vm194_vm1 = vcmp.gt.s32.totalorder %v193_v18, 0 }
  0x35   :  { %v92_v15 = vsel %vm91_vm0, %v90_v13, 0  ;;  %v195_v43 = vsel %vm194_vm1, %v193_v18, 0 }
  0x36   :  { %v94_v16 = vand.u32 31, %v92_v15  ;;  %v1192_v24 = vshrl.u32 %v92_v15, 5  ;;  %v197_v51 = vand.u32 31, %v195_v43  ;;  %v1232_v0 = vshrl.u32 %v195_v43, 5  ;;  %v59_v15 = vld [vmem:[#allocation3 + $0x18] sm:$0xff] }
  0x38   :  { %v95_v17 = vsub.s32 32, %v94_v16  ;;  %v106_v21 = vshll.u32 %v1138_v20, %v94_v16  ;;  %v109_v27 = vshll.u32 %v1139_v25, %v94_v16  ;;  %v97_v31 = vshll.u32 %v1141_v30, %v94_v16 }
  0x39   :  { %v100_v33 = vshll.u32 %v1142_v32, %v94_v16  ;;  %v103_v37 = vshll.u32 %v1143_v35, %v94_v16  ;;  %vm115_vm2 = vcmp.lt.s32.totalorder %v1192_v24, 4  ;;  %vm112_vm3 = vcmp.lt.s32.totalorder %v1192_v24, 1 }
  0x3a   :  { %v107_v26 = vshrl.u32 %v1139_v25, %v95_v17  ;;  %v110_v29 = vshrl.u32 %v1140_v28, %v95_v17  ;;  %v98_v34 = vshrl.u32 %v1142_v32, %v95_v17  ;;  %v101_v36 = vshrl.u32 %v1143_v35, %v95_v17 }
  0x3b   :  { %v104_v38 = vshrl.u32 %v1138_v20, %v95_v17  ;;  %vm114_vm4 = vcmp.lt.s32.totalorder %v1192_v24, 3  ;;  %vm113_vm5 = vcmp.lt.s32.totalorder %v1192_v24, 2  ;;  %v198_v58 = vsub.s32 32, %v197_v51 }
  0x3c   :  { %v108_v40 = vor.u32 %v107_v26, %v106_v21  ;;  %v111_v42 = vor.u32 %v110_v29, %v109_v27  ;;  %v99_v44 = vor.u32 %v98_v34, %v97_v31  ;;  %v102_v45 = vor.u32 %v101_v36, %v100_v33 }
  0x3d   :  { %v105_v46 = vor.u32 %v104_v38, %v103_v37  ;;  %v96_v62 = vshrl.u32 %v1141_v30, %v95_v17  ;;  %v209_v4 = vshll.u32 %v1138_v20, %v197_v51  ;;  %v210_v5 = vshrl.u32 %v1139_v25, %v198_v58 }
  0x3e   :  { %v121_v48 = vsel %vm115_vm2, %v108_v40, 920167782  ;;  %v125_v50 = vsel %vm115_vm2, %v111_v42, 1326507024  ;;  %v120_v52 = vsel %vm112_vm3, %v99_v44, %v102_v45  ;;  %v212_v10 = vshll.u32 %v1139_v25, %v197_v51 }
  0x3f   :  { %v122_v53 = vsel %vm114_vm4, %v105_v46, %v121_v48  ;;  %v124_v54 = vsel %vm112_vm3, %v102_v45, %v105_v46  ;;  %v126_v55 = vsel %vm114_vm4, %v108_v40, %v125_v50  ;;  %v117_v63 = vsel %vm115_vm2, %v105_v46, 2102212464 }
  0x40   :  { %v123_v59 = vsel %vm113_vm5, %v120_v52, %v122_v53  ;;  %v127_v60 = vsel %vm113_vm5, %v124_v54, %v126_v55  ;;  %v213_v11 = vshrl.u32 %v1140_v28, %v198_v58  ;;  %v200_v12 = vshll.u32 %v1141_v30, %v197_v51 }
  0x41   :  { %v1234_v2 = vmul.u32.u64.low %v128_v57, %v123_v59  ;;  %v1235_v3 = vmul.u32.u64.high %v128_v57, %v123_v59, %v1234_v2  ;;  %v1240_v8 = vmul.u32.u64.low %v128_v57, %v127_v60  ;;  %v1241_v9 = vmul.u32.u64.high %v128_v57, %v127_v60, %v1240_v8 }
  0x42   :  { %v203_v13 = vshll.u32 %v1142_v32, %v197_v51  ;;  %v201_v16 = vshrl.u32 %v1142_v32, %v198_v58  ;;  %v204_v17 = vshrl.u32 %v1143_v35, %v198_v58  ;;  %v206_v18 = vshll.u32 %v1143_v35, %v197_v51 }
  0x43   :  { %v207_v21 = vshrl.u32 %v1138_v20, %v198_v58  ;;  %v116_v22 = vsel %vm112_vm3, %v96_v62, %v99_v44  ;;  %v118_v23 = vsel %vm114_vm4, %v102_v45, %v117_v63  ;;  %v211_v26 = vor.u32 %v210_v5, %v209_v4 }
  0x44   :  { %v190_v27 = vand.u32 8388607, %v1975_v61  ;;  %v214_v29 = vor.u32 %v213_v11, %v212_v10  ;;  %vm218_vm6 = vcmp.lt.s32.totalorder %v1232_v0, 4  ;;  %v973_v31 = vadd.s32 4294967169, %v290_v1 }
  0x45   :  { %v67_v33 = vsub.f32 %v51_v14, %v59_v15  ;;  %v119_v34 = vsel %vm113_vm5, %v116_v22, %v118_v23  ;;  %v202_v36 = vor.u32 %v201_v16, %v200_v12  ;;  %v205_v37 = vor.u32 %v204_v17, %v203_v13 }
  0x46   :  { %v208_v38 = vor.u32 %v207_v21, %v206_v18  ;;  %v138_v39 = vadd.s32 1, %v1235_v3  ;;  %vm215_vm7 = vcmp.lt.s32.totalorder %v1232_v0, 1  ;;  %vm217_vm8 = vcmp.lt.s32.totalorder %v1232_v0, 3 }
  0x47   :  { %v224_v40 = vsel %vm218_vm6, %v211_v26, 920167782  ;;  %vm137_vm9 = vc.u32 %v1241_v9, %v1234_v2  ;;  %v191_v41 = vor.u32 8388608, %v190_v27  ;;  %v228_v24 = vsel %vm218_vm6, %v214_v29, 1326507024 }
  0x48   :  { %v296_v42 = vadd.s32 1, %v973_v31  ;;  %v135_v43 = vmul.u32 %v128_v57, %v119_v34  ;;  %vm216_vm10 = vcmp.lt.s32.totalorder %v1232_v0, 2  ;;  %v223_v44 = vsel %vm215_vm7, %v202_v36, %v205_v37 }
  0x49   :  { %v225_v45 = vsel %vm217_vm8, %v208_v38, %v224_v40  ;;  %v139_v46 = vsel %vm137_vm9, %v138_v39, %v1235_v3  ;;  %v227_v48 = vsel %vm215_vm7, %v205_v37, %v208_v38  ;;  %v229_v49 = vsel %vm217_vm8, %v211_v26, %v228_v24 }
  0x4a   :  { %v1279_v50 = vmul.f32 6.2831855, %v67_v33  ;;  %v231_v51 = vshll.u32 %v191_v41, 8  ;;  %vm297_vm11 = vcmp.gt.s32.totalorder %v296_v42, 0  ;;  %v226_v52 = vsel %vm216_vm10, %v223_v44, %v225_v45 }
  0x4b   :  { %v140_v53 = vadd.s32 %v139_v46, %v135_v43  ;;  %v230_v54 = vsel %vm216_vm10, %v227_v48, %v229_v49  ;;  %v298_v55 = vsel %vm297_vm11, %v296_v42, 0  ;;  %v199_v60 = vshrl.u32 %v1141_v30, %v198_v58  ;;  %v52_v42 = vld [vmem:[#allocation6 + $0x20] sm:$0xff] }
  0x4c   :  { %v1285_v56 = vmul.u32.u64.low %v231_v51, %v226_v52  ;;  %v1286_v57 = vmul.u32.u64.high %v231_v51, %v226_v52, %v1285_v56  ;;  %v392_v59 = vand.u32 2139095040, %v1279_v50  ;;  %v220_v3 = vsel %vm218_vm6, %v208_v38, 2102212464  ;;  %v60_v46 = vld [vmem:[#allocation3 + $0x20] sm:$0xff] }
  0x4d   :  { %v1291_v62 = vmul.u32.u64.low %v231_v51, %v230_v54  ;;  %v1292_v63 = vmul.u32.u64.high %v231_v51, %v230_v54, %v1291_v62  ;;  %v141_v1 = vadd.s32 536870912, %v140_v53  ;;  %v300_v4 = vand.u32 31, %v298_v55 }
  0x4e   :  { %v393_v5 = vshrl.u32 %v392_v59, 23  ;;  %v219_v8 = vsel %vm215_vm7, %v199_v60, %v202_v36  ;;  %v221_v10 = vsel %vm217_vm8, %v205_v37, %v220_v3  ;;  %v241_v13 = vadd.s32 1, %v1286_v57 }
  0x4f   :  { %v1300_v11 = vshrl.u32 %v141_v1, 30  ;;  %v301_v12 = vsub.s32 32, %v300_v4  ;;  %v222_v58 = vsel %vm216_vm10, %v219_v8, %v221_v10  ;;  %vm240_vm12 = vc.u32 %v1292_v63, %v1285_v56 }
  0x50   :  { %v977_v14 = vadd.s32 4294967169, %v393_v5  ;;  %v1974_v16 = vand.u32 2147483647, %v1206_v47  ;;  %v312_v17 = vshll.u32 %v1138_v20, %v300_v4  ;;  %v238_v21 = vmul.u32 %v231_v51, %v222_v58 }
  0x51   :  { %v143_v15 = vshll.u32 %v1300_v11, 30  ;;  %v313_v18 = vshrl.u32 %v1139_v25, %v301_v12  ;;  %v1311_v22 = vshrl.u32 %v298_v55, 5  ;;  %v315_v0 = vshll.u32 %v1139_v25, %v300_v4 }
  0x52   :  { %v316_v23 = vshrl.u32 %v1140_v28, %v301_v12  ;;  %v242_v26 = vsel %vm240_vm12, %v241_v13, %v1286_v57  ;;  %v303_v27 = vshll.u32 %v1141_v30, %v300_v4  ;;  %v306_v29 = vshll.u32 %v1142_v32, %v300_v4 }
  0x53   :  { %v399_v31 = vadd.s32 1, %v977_v14  ;;  %v304_v33 = vshrl.u32 %v1142_v32, %v301_v12  ;;  %v307_v34 = vshrl.u32 %v1143_v35, %v301_v12  ;;  %v309_v36 = vshll.u32 %v1143_v35, %v300_v4  ;;  %v53_v14 = vld [vmem:[#allocation6 + $0x28] sm:$0xff] }
  0x54   :  { %v310_v37 = vshrl.u32 %v1138_v20, %v301_v12  ;;  %v1322_v38 = vsub.s32 %v140_v53, %v143_v15  ;;  %v314_v39 = vor.u32 %v313_v18, %v312_v17  ;;  %v293_v40 = vand.u32 8388607, %v1974_v16  ;;  %v61_v15 = vld [vmem:[#allocation3 + $0x28] sm:$0xff] }
  0x55   :  { %v317_v41 = vor.u32 %v316_v23, %v315_v0  ;;  %vm321_vm13 = vcmp.lt.s32.totalorder %v1311_v22, 4  ;;  %v243_v24 = vadd.s32 %v242_v26, %v238_v21  ;;  %vm400_vm14 = vcmp.gt.s32.totalorder %v399_v31, 0 }
  0x56   :  { %v305_v43 = vor.u32 %v304_v33, %v303_v27  ;;  %v308_v44 = vor.u32 %v307_v34, %v306_v29  ;;  %v311_v45 = vor.u32 %v310_v37, %v309_v36  ;;  %v146_v48 = vsub.s32 0, %v1322_v38 }
  0x57   :  { %vm318_vm15 = vcmp.lt.s32.totalorder %v1311_v22, 1  ;;  %vm320_vm0 = vcmp.lt.s32.totalorder %v1311_v22, 3  ;;  %v327_v49 = vsel %vm321_vm13, %v314_v39, 920167782  ;;  %v294_v51 = vor.u32 8388608, %v293_v40 }
  0x58   :  { %v331_v52 = vsel %vm321_vm13, %v317_v41, 1326507024  ;;  %v401_v53 = vsel %vm400_vm14, %v399_v31, 0  ;;  %v244_v54 = vadd.s32 536870912, %v243_v24  ;;  %v68_v55 = vsub.f32 %v52_v42, %v60_v46  ;;  %v54_v41 = vld [vmem:[#allocation6 + $0x30] sm:$0xff] }
  0x59   :  { %vm319_vm1 = vcmp.lt.s32.totalorder %v1311_v22, 2  ;;  %v326_v57 = vsel %vm318_vm15, %v305_v43, %v308_v44  ;;  %v328_v59 = vsel %vm320_vm0, %v311_v45, %v327_v49  ;;  %v966_v60 = vmin.u32 %v146_v48, %v1322_v38  ;;  %v62_v42 = vld [vmem:[#allocation3 + $0x30] sm:$0xff] }
  0x5a   :  { %v330_v62 = vsel %vm318_vm15, %v308_v44, %v311_v45  ;;  %v332_v1 = vsel %vm320_vm0, %v314_v39, %v331_v52  ;;  %v403_v3 = vand.u32 31, %v401_v53  ;;  %v1344_v4 = vshll.u32 %v294_v51, 8 }
  0x5b   :  { %v1346_v5 = vshrl.u32 %v244_v54, 30  ;;  %v329_v8 = vsel %vm319_vm1, %v326_v57, %v328_v59  ;;  %v302_v10 = vshrl.u32 %v1141_v30, %v301_v12  ;;  %v333_v58 = vsel %vm319_vm1, %v330_v62, %v332_v1 }
  0x5c   :  { %v1972_v13 = vand.u32 2147483647, %v1279_v50  ;;  %v1354_v17 = vmul.f32 6.2831855, %v68_v55  ;;  %v148_v18 = vclz %v966_v60  ;;  %v1356_v21 = vsub.s32 32, %v403_v3 }
  0x5d   :  { %v1359_v0 = vmul.u32.u64.low %v1344_v4, %v329_v8  ;;  %v1360_v23 = vmul.u32.u64.high %v1344_v4, %v329_v8, %v1359_v0  ;;  %v246_v26 = vshll.u32 %v1346_v5, 30  ;;  %v323_v12 = vsel %vm321_vm13, %v311_v45, 2102212464 }
  0x5e   :  { %v1367_v27 = vmul.u32.u64.low %v1344_v4, %v333_v58  ;;  %v1368_v29 = vmul.u32.u64.high %v1344_v4, %v333_v58, %v1367_v27  ;;  %v69_v31 = vsub.f32 %v53_v14, %v61_v15  ;;  %v322_v33 = vsel %vm318_vm15, %v302_v10, %v305_v43 }
  0x5f   :  { %v396_v34 = vand.u32 8388607, %v1972_v13  ;;  %v967_v36 = vadd.s32 4294967294, %v148_v18  ;;  %v415_v37 = vshll.u32 %v1138_v20, %v403_v3  ;;  %v416_v39 = vshrl.u32 %v1139_v25, %v1356_v21 }
  0x60   :  { %v495_v40 = vand.u32 2139095040, %v1354_v17  ;;  %v324_v45 = vsel %vm320_vm0, %v308_v44, %v323_v12  ;;  %v1380_v46 = vshrl.u32 %v401_v53, 5  ;;  %v418_v43 = vshll.u32 %v1139_v25, %v403_v3 }
  0x61   :  { %v419_v48 = vshrl.u32 %v1140_v28, %v1356_v21  ;;  %v1385_v49 = vsub.s32 %v243_v24, %v246_v26  ;;  %v406_v51 = vshll.u32 %v1141_v30, %v403_v3  ;;  %v407_v52 = vshrl.u32 %v1142_v32, %v1356_v21 }
  0x62   :  { %v409_v54 = vshll.u32 %v1142_v32, %v403_v3  ;;  %v410_v55 = vshrl.u32 %v1143_v35, %v1356_v21  ;;  %v412_v44 = vshll.u32 %v1143_v35, %v403_v3  ;;  %v413_v53 = vshrl.u32 %v1138_v20, %v1356_v21 }
  0x63   :  { %v496_v57 = vshrl.u32 %v495_v40, 23  ;;  %v70_v59 = vsub.f32 %v54_v41, %v62_v42  ;;  %v1396_v60 = vmul.f32 6.2831855, %v69_v31  ;;  %v325_v24 = vsel %vm319_vm1, %v322_v33, %v324_v45 }
  0x64   :  { %v417_v62 = vor.u32 %v416_v39, %v415_v37  ;;  %v344_v1 = vadd.s32 1, %v1360_v23  ;;  %v420_v8 = vor.u32 %v419_v48, %v418_v43  ;;  %vm424_vm2 = vcmp.lt.s32.totalorder %v1380_v46, 4 }
  0x65   :  { %v981_v10 = vadd.s32 4294967169, %v496_v57  ;;  %vm968_vm3 = vcmp.lt.s32.totalorder %v967_v36, 0  ;;  %v249_v3 = vsub.s32 0, %v1385_v49  ;;  %vm343_vm4 = vc.u32 %v1368_v29, %v1359_v0 }
  0x66   :  { %v397_v58 = vor.u32 8388608, %v396_v34  ;;  %v1405_v14 = vor.u32 %v407_v52, %v406_v51  ;;  %v1407_v15 = vor.u32 %v410_v55, %v409_v54  ;;  %v414_v22 = vor.u32 %v413_v53, %v412_v44 }
  0x67   :  { %v502_v18 = vadd.s32 1, %v981_v10  ;;  %v341_v26 = vmul.u32 %v1344_v4, %v325_v24  ;;  %vm421_vm5 = vcmp.lt.s32.totalorder %v1380_v46, 1  ;;  %vm423_vm6 = vcmp.lt.s32.totalorder %v1380_v46, 3 }
  0x68   :  { %v430_v12 = vsel %vm424_vm2, %v417_v62, 920167782  ;;  %v345_v27 = vsel %vm343_vm4, %v344_v1, %v1360_v23  ;;  %v434_v31 = vsel %vm424_vm2, %v420_v8, 1326507024  ;;  %v1973_v33 = vand.u32 2147483647, %v1354_v17 }
  0x69   :  { %vm503_vm7 = vcmp.gt.s32.totalorder %v502_v18, 0  ;;  %v1419_v34 = vsel %vm968_vm3, 0, %v967_v36  ;;  %v970_v4 = vmin.u32 %v249_v3, %v1385_v49  ;;  %v598_v39 = vand.u32 2139095040, %v1396_v60 }
  0x6a   :  { %v504_v37 = vsel %vm503_vm7, %v502_v18, 0  ;;  %v1423_v40 = vmul.f32 6.2831855, %v70_v59  ;;  %vm422_vm8 = vcmp.lt.s32.totalorder %v1380_v46, 2  ;;  %v429_v23 = vsel %vm421_vm5, %v1405_v14, %v1407_v15 }
  0x6b   :  { %v431_v41 = vsel %vm423_vm6, %v414_v22, %v430_v12  ;;  %v1432_v42 = vadd.s32 %v345_v27, %v341_v26  ;;  %v433_v36 = vsel %vm421_vm5, %v1407_v15, %v414_v22  ;;  %v435_v45 = vsel %vm423_vm6, %v417_v62, %v434_v31 }
  0x6c   :  { %v506_v43 = vand.u32 31, %v504_v37  ;;  %v1441_v48 = vadd.s32 %v1234_v2, %v1241_v9  ;;  %v156_v51 = vsub.s32 4294967266, %v1419_v34  ;;  %v1444_v52 = vshll.u32 %v397_v58, 8 }
  0x6d   :  { %v499_v54 = vand.u32 8388607, %v1973_v33  ;;  %v251_v55 = vclz %v970_v4  ;;  %v432_v44 = vsel %vm422_vm8, %v429_v23, %v431_v41  ;;  %v599_v57 = vshrl.u32 %v598_v39, 23 }
  0x6e   :  { %v507_v53 = vsub.s32 32, %v506_v43  ;;  %v405_v59 = vshrl.u32 %v1141_v30, %v1356_v21  ;;  %v436_v2 = vsel %vm422_vm8, %v433_v36, %v435_v45  ;;  %v509_v9 = vshll.u32 %v1141_v30, %v506_v43 }
  0x6f   :  { %v512_v24 = vshll.u32 %v1142_v32, %v506_v43  ;;  %v347_v62 = vadd.s32 536870912, %v1432_v42  ;;  %v505_v1 = vshrl.u32 %v504_v37, 5  ;;  %v500_v21 = vor.u32 8388608, %v499_v54 }
  0x70   :  { %v510_v8 = vshrl.u32 %v1142_v32, %v507_v53  ;;  %v513_v10 = vshrl.u32 %v1143_v35, %v507_v53  ;;  %v1460_v3 = vmul.u32.u64.low %v1444_v52, %v432_v44  ;;  %v1461_v58 = vmul.u32.u64.high %v1444_v52, %v432_v44, %v1460_v3 }
  0x71   :  { %v515_v18 = vshll.u32 %v1143_v35, %v506_v43  ;;  %v1466_v26 = vmul.u32.u64.low %v1444_v52, %v436_v2  ;;  %v1467_v12 = vmul.u32.u64.high %v1444_v52, %v436_v2, %v1466_v26  ;;  %v508_v27 = vshrl.u32 %v1141_v30, %v507_v53 }
  0x72   :  { %v985_v31 = vadd.s32 4294967169, %v599_v57  ;;  %v511_v4 = vor.u32 %v510_v8, %v509_v9  ;;  %v514_v37 = vor.u32 %v513_v10, %v512_v24  ;;  %v516_v39 = vshrl.u32 %v1138_v20, %v507_v53 }
  0x73   :  { %v518_v23 = vshll.u32 %v1138_v20, %v506_v43  ;;  %v519_v41 = vshrl.u32 %v1139_v25, %v507_v53  ;;  %v521_v36 = vshll.u32 %v1139_v25, %v506_v43  ;;  %v522_v45 = vshrl.u32 %v1140_v28, %v507_v53 }
  0x74   :  { %vm524_vm9 = vcmp.lt.s32.totalorder %v505_v1, 1  ;;  %v426_v54 = vsel %vm424_vm2, %v414_v22, 2102212464  ;;  %v517_v44 = vor.u32 %v516_v39, %v515_v18  ;;  %vm527_vm10 = vcmp.lt.s32.totalorder %v505_v1, 4 }
  0x75   :  { %v540_v2 = vshll.u32 %v500_v21, 8  ;;  %v520_v57 = vor.u32 %v519_v41, %v518_v23  ;;  %v523_v9 = vor.u32 %v522_v45, %v521_v36  ;;  %vm525_vm11 = vcmp.lt.s32.totalorder %v505_v1, 2 }
  0x76   :  { %vm526_vm12 = vcmp.lt.s32.totalorder %v505_v1, 3  ;;  %v528_v24 = vsel %vm524_vm9, %v508_v27, %v511_v4  ;;  %v529_v8 = vsel %vm527_vm10, %v517_v44, 2102212464  ;;  %v532_v10 = vsel %vm524_vm9, %v511_v4, %v514_v37 }
  0x77   :  { %v605_v26 = vadd.s32 1, %v985_v31  ;;  %v530_v13 = vsel %vm526_vm12, %v514_v37, %v529_v8  ;;  %v533_v43 = vsel %vm527_vm10, %v520_v57, 920167782  ;;  %v536_v33 = vsel %vm524_vm9, %v514_v37, %v517_v44 }
  0x78   :  { %v537_v53 = vsel %vm527_vm10, %v523_v9, 1326507024  ;;  %v152_v16 = vsub.s32 32, %v1419_v34  ;;  %v157_v61 = vadd.s32 127, %v156_v51  ;;  %v971_v22 = vadd.s32 4294967294, %v251_v55 }
  0x79   :  { %v1479_v18 = vshrl.u32 %v347_v62, 30  ;;  %v425_v21 = vsel %vm421_vm5, %v405_v59, %v1405_v14  ;;  %v534_v27 = vsel %vm526_vm12, %v517_v44, %v533_v43  ;;  %v538_v4 = vsel %vm526_vm12, %v520_v57, %v537_v53 }
  0x7a   :  { %vm606_vm13 = vcmp.gt.s32.totalorder %v605_v26, 0  ;;  %v427_v31 = vsel %vm423_vm6, %v1407_v15, %v426_v54  ;;  %v531_v37 = vsel %vm525_vm11, %v528_v24, %v530_v13  ;;  %v535_v51 = vsel %vm525_vm11, %v532_v10, %v534_v27 }
  0x7b   :  { %v539_v55 = vsel %vm525_vm11, %v536_v33, %v538_v4  ;;  %v1495_v23 = vmul.u32.u64.low %v540_v2, %v535_v51  ;;  %v1496_v14 = vmul.u32.u64.high %v540_v2, %v535_v51, %v1495_v23  ;;  %vm972_vm14 = vcmp.lt.s32.totalorder %v971_v22, 0 }
  0x7c   :  { %v1492_v62 = vmul.u32.u64.low %v540_v2, %v539_v55  ;;  %v1493_v39 = vmul.u32.u64.high %v540_v2, %v539_v55, %v1492_v62  ;;  %v349_v59 = vshll.u32 %v1479_v18, 30  ;;  %v1977_v41 = vand.u32 2147483647, %v1396_v60 }
  0x7d   :  { %v607_v36 = vsel %vm606_vm13, %v605_v26, 0  ;;  %v1503_v13 = vadd.s32 %v1285_v56, %v1292_v63  ;;  %v428_v15 = vsel %vm422_vm8, %v425_v21, %v427_v31  ;;  %v447_v33 = vadd.s32 1, %v1461_v58 }
  0x7e   :  { %v609_v1 = vand.u32 31, %v607_v36  ;;  %v153_v45 = vshll.u32 %v1322_v38, %v1419_v34  ;;  %v154_v54 = vshrl.u32 %v1441_v48, %v152_v16  ;;  %vm446_vm15 = vc.u32 %v1467_v12, %v1460_v3 }
  0x7f   :  { %v547_v44 = vmul.u32 %v540_v2, %v531_v37  ;;  %v158_v57 = vshll.u32 %v157_v61, 23  ;;  %v1513_v9 = vsel %vm972_vm14, 0, %v971_v22  ;;  %vm549_vm0 = vc.u32 %v1493_v39, %v1495_v23 }
  0x80   :  { %v550_v56 = vadd.s32 1, %v1496_v14  ;;  %v1519_v63 = vsub.s32 %v1432_v42, %v349_v59  ;;  %v444_v46 = vmul.u32 %v1444_v52, %v428_v15  ;;  %v602_v16 = vand.u32 8388607, %v1977_v41 }
  0x81   :  { %v610_v38 = vsub.s32 32, %v609_v1  ;;  %v448_v34 = vsel %vm446_vm15, %v447_v33, %v1461_v58  ;;  %v612_v48 = vshll.u32 %v1141_v30, %v609_v1  ;;  %v615_v2 = vshll.u32 %v1142_v32, %v609_v1 }
  0x82   :  { %v551_v61 = vsel %vm549_vm0, %v550_v56, %v1496_v14  ;;  %v608_v8 = vshrl.u32 %v607_v36, 5  ;;  %v618_v10 = vshll.u32 %v1143_v35, %v609_v1  ;;  %v621_v43 = vshll.u32 %v1138_v20, %v609_v1 }
  0x83   :  { %v1528_v24 = vadd.s32 %v551_v61, %v547_v44  ;;  %v613_v42 = vshrl.u32 %v1142_v32, %v610_v38  ;;  %v616_v52 = vshrl.u32 %v1143_v35, %v610_v38  ;;  %v619_v26 = vshrl.u32 %v1138_v20, %v610_v38 }
  0x84   :  { %v622_v58 = vshrl.u32 %v1139_v25, %v610_v38  ;;  %v155_v53 = vor.u32 %v154_v54, %v153_v45  ;;  %v1536_v22 = vadd.s32 %v448_v34, %v444_v46  ;;  %v603_v21 = vor.u32 8388608, %v602_v16 }
  0x85   :  { %v624_v27 = vshll.u32 %v1139_v25, %v609_v1  ;;  %v614_v4 = vor.u32 %v613_v42, %v612_v48  ;;  %v617_v31 = vor.u32 %v616_v52, %v615_v2  ;;  %v625_v51 = vshrl.u32 %v1140_v28, %v610_v38 }
  0x86   :  { %v623_v37 = vor.u32 %v622_v58, %v621_v43  ;;  %v159_v55 = vor.u32 4788187, %v158_v57  ;;  %v259_v62 = vsub.s32 4294967266, %v1513_v9  ;;  %v620_v14 = vor.u32 %v619_v26, %v618_v10 }
  0x87   :  { %vm627_vm1 = vcmp.lt.s32.totalorder %v608_v8, 1  ;;  %v352_v59 = vsub.s32 0, %v1519_v63  ;;  %v553_v36 = vadd.s32 536870912, %v1528_v24  ;;  %vm629_vm2 = vcmp.lt.s32.totalorder %v608_v8, 3 }
  0x88   :  { %vm630_vm3 = vcmp.lt.s32.totalorder %v608_v8, 4  ;;  %v450_v15 = vadd.s32 536870912, %v1536_v22  ;;  %v611_v33 = vshrl.u32 %v1141_v30, %v610_v38  ;;  %v626_v1 = vor.u32 %v625_v51, %v624_v27 }
  0x89   :  { %vm628_vm4 = vcmp.lt.s32.totalorder %v608_v8, 2  ;;  %v162_v45 = vcvt.s32.f32 %v155_v53  ;;  %v635_v54 = vsel %vm627_vm1, %v614_v4, %v617_v31  ;;  %v636_v44 = vsel %vm630_vm3, %v623_v37, 920167782 }
  0x8a   :  { %v643_v57 = vshll.u32 %v603_v21, 8  ;;  %v160_v56 = vand.u32 2147483647, %v159_v55  ;;  %v255_v46 = vsub.s32 32, %v1513_v9  ;;  %v632_v16 = vsel %vm630_vm3, %v620_v14, 2102212464 }
  0x8b   :  { %v637_v34 = vsel %vm629_vm2, %v620_v14, %v636_v44  ;;  %v260_v61 = vadd.s32 127, %v259_v62  ;;  %v974_v48 = vmin.u32 %v352_v59, %v1519_v63  ;;  %v1551_v2 = vshrl.u32 %v553_v36, 30  ;;  %v63_v44 = vld [vmem:[#allocation3 + $0x38] sm:$0xff] }
  0x8c   :  { %v638_v38 = vsel %vm628_vm4, %v635_v54, %v637_v34  ;;  %v1554_v42 = vshrl.u32 %v450_v15, 30  ;;  %v631_v10 = vsel %vm627_vm1, %v611_v33, %v614_v4  ;;  %v639_v52 = vsel %vm627_vm1, %v617_v31, %v620_v14  ;;  %v55_v54 = vld [vmem:[#allocation6 + $0x38] sm:$0xff] }
  0x8d   :  { %v640_v26 = vsel %vm630_vm3, %v626_v1, 1326507024  ;;  %v633_v43 = vsel %vm629_vm2, %v617_v31, %v632_v16  ;;  %v1561_v53 = vmul.u32.u64.low %v643_v57, %v638_v38  ;;  %v1562_v21 = vmul.u32.u64.high %v643_v57, %v638_v38, %v1561_v53 }
  0x8e   :  { %v641_v58 = vsel %vm629_vm2, %v623_v37, %v640_v26  ;;  %v163_v27 = vmul.f32 %v162_v45, %v160_v56  ;;  %v166_v51 = vsub.s32 4, %v1300_v11  ;;  %v256_v55 = vshll.u32 %v1385_v49, %v1513_v9 }
  0x8f   :  { %v257_v4 = vshrl.u32 %v1503_v13, %v255_v46  ;;  %v261_v62 = vshll.u32 %v260_v61, 23  ;;  %v555_v14 = vshll.u32 %v1551_v2, 30  ;;  %v642_v59 = vsel %vm628_vm4, %v639_v52, %v641_v58 }
  0x90   :  { %v701_v31 = vand.u32 2139095040, %v1423_v40  ;;  %v452_v37 = vshll.u32 %v1554_v42, 30  ;;  %v634_v36 = vsel %vm628_vm4, %v631_v10, %v633_v43  ;;  %vm82_vm5 = vcmp.lt.s32.totalorder %v1184_v6, 0 }
  0x91   :  { %v1574_v15 = vmul.u32.u64.low %v643_v57, %v642_v59  ;;  %v1575_v33 = vmul.u32.u64.high %v643_v57, %v642_v59, %v1574_v15  ;;  %v354_v1 = vclz %v974_v48  ;;  %v653_v49 = vadd.s32 1, %v1562_v21 }
  0x92   :  { %v702_v13 = vshrl.u32 %v701_v31, 23  ;;  %v164_v9 = vxor.u32 2147483648, %v163_v27  ;;  %v167_v45 = vsel %vm82_vm5, %v166_v51, %v1300_v11  ;;  %v258_v56 = vor.u32 %v257_v4, %v256_v55 }
  0x93   :  { %v1583_v8 = vsub.s32 %v1528_v24, %v555_v14  ;;  %v650_v46 = vmul.u32 %v643_v57, %v634_v36  ;;  %v262_v34 = vor.u32 4788187, %v261_v62  ;;  %v1586_v61 = vsub.s32 %v1536_v22, %v452_v37 }
  0x94   :  { %v989_v16 = vadd.s32 4294967169, %v702_v13  ;;  %vm652_vm6 = vc.u32 %v1575_v33, %v1561_v53  ;;  %vm1592_vm7 = vcmp.le.f32.partialorder %v80_v19, 0.7853982  ;;  %v975_v11 = vadd.s32 4294967294, %v354_v1 }
  0x95   :  { %v654_v38 = vsel %vm652_vm6, %v653_v49, %v1562_v21  ;;  %v71_v10 = vsub.f32 %v55_v54, %v63_v44  ;;  %v165_v57 = vsel %vm82_vm5, %v164_v9, %v163_v27  ;;  %v169_v22 = vsel %vm1592_vm7, 0, %v167_v45 }
  0x96   :  { %v708_v24 = vadd.s32 1, %v989_v16  ;;  %v265_v52 = vcvt.s32.f32 %v258_v56  ;;  %v558_v26 = vsub.s32 0, %v1583_v8  ;;  %v655_v43 = vadd.s32 %v654_v38, %v650_v46 }
  0x97   :  { %v263_v19 = vand.u32 2147483647, %v262_v34  ;;  %v455_v58 = vsub.s32 0, %v1586_v61  ;;  %v1976_v51 = vand.u32 2147483647, %v1423_v40  ;;  %vm976_vm9 = vcmp.lt.s32.totalorder %v975_v11, 0 }
  0x98   :  { %vm709_vm8 = vcmp.gt.s32.totalorder %v708_v24, 0  ;;  %v656_v21 = vadd.s32 536870912, %v655_v43  ;;  %v1604_v62 = vmul.f32 6.2831855, %v71_v10  ;;  %v1606_v27 = vand.u32 3, %v169_v22 }
  0x99   :  { %v710_v55 = vsel %vm709_vm8, %v708_v24, 0  ;;  %v1611_v59 = vadd.s32 %v1359_v0, %v1368_v29  ;;  %v1616_v31 = vsel %vm1592_vm7, %v1184_v6, %v165_v57  ;;  %v982_v37 = vmin.u32 %v558_v26, %v1583_v8 }
  0x9a   :  { %v712_v4 = vand.u32 31, %v710_v55  ;;  %v1619_v36 = vshrl.u32 %v656_v21, 30  ;;  %v1621_v1 = vmul.f32 %v265_v52, %v263_v19  ;;  %v1623_v49 = vsel %vm976_vm9, 0, %v975_v11 }
  0x9b   :  { %v978_v13 = vmin.u32 %v455_v58, %v1586_v61  ;;  %v705_v0 = vand.u32 8388607, %v1976_v51  ;;  %v711_v44 = vshrl.u32 %v710_v55, 5  ;;  %v560_v34 = vclz %v982_v37 }
  0x9c   :  { %v713_v15 = vsub.s32 32, %v712_v4  ;;  %v658_v29 = vshll.u32 %v1619_v36, 30  ;;  %v715_v9 = vshll.u32 %v1141_v30, %v712_v4  ;;  %v718_v54 = vshll.u32 %v1142_v32, %v712_v4 }
  0x9d   :  { %v724_v46 = vshll.u32 %v1138_v20, %v712_v4  ;;  %v721_v11 = vshll.u32 %v1143_v35, %v712_v4  ;;  %v267_v24 = vxor.u32 2147483648, %v1621_v1  ;;  %v706_v10 = vor.u32 8388608, %v705_v0 }
  0x9e   :  { %v716_v45 = vshrl.u32 %v1142_v32, %v713_v15  ;;  %v719_v56 = vshrl.u32 %v1143_v35, %v713_v15  ;;  %v725_v16 = vshrl.u32 %v1139_v25, %v713_v15  ;;  %v1635_v48 = vsub.s32 %v655_v43, %v658_v29 }
  0x9f   :  { %v722_v38 = vshrl.u32 %v1138_v20, %v713_v15  ;;  %v727_v57 = vshll.u32 %v1139_v25, %v712_v4  ;;  %v804_v22 = vand.u32 2139095040, %v1604_v62  ;;  %v728_v58 = vshrl.u32 %v1140_v28, %v713_v15 }
  0xa0   :  { %v661_v52 = vsub.s32 0, %v1635_v48  ;;  %v717_v26 = vor.u32 %v716_v45, %v715_v9  ;;  %v720_v19 = vor.u32 %v719_v56, %v718_v54  ;;  %vm185_vm10 = vcmp.lt.s32.totalorder %v1186_v7, 0 }
  0xa1   :  { %v362_v43 = vsub.s32 4294967266, %v1623_v49  ;;  %v457_v55 = vclz %v978_v13  ;;  %v726_v21 = vor.u32 %v725_v16, %v724_v46  ;;  %vm730_vm11 = vcmp.lt.s32.totalorder %v711_v44, 1 }
  0xa2   :  { %v983_v37 = vadd.s32 4294967294, %v560_v34  ;;  %v986_v0 = vmin.u32 %v661_v52, %v1635_v48  ;;  %v714_v4 = vshrl.u32 %v1141_v30, %v713_v15  ;;  %v723_v29 = vor.u32 %v722_v38, %v721_v11 }
  0xa3   :  { %v729_v51 = vor.u32 %v728_v58, %v727_v57  ;;  %vm732_vm12 = vcmp.lt.s32.totalorder %v711_v44, 3  ;;  %vm733_vm13 = vcmp.lt.s32.totalorder %v711_v44, 4  ;;  %v805_v9 = vshrl.u32 %v804_v22, 23 }
  0xa4   :  { %vm731_vm14 = vcmp.lt.s32.totalorder %v711_v44, 2  ;;  %v735_v45 = vsel %vm733_vm13, %v723_v29, 2102212464  ;;  %v738_v54 = vsel %vm730_vm11, %v717_v26, %v720_v19  ;;  %v746_v56 = vshll.u32 %v706_v10, 8 }
  0xa5   :  { %v358_v13 = vsub.s32 32, %v1623_v49  ;;  %v363_v46 = vadd.s32 127, %v362_v43  ;;  %v663_v16 = vclz %v986_v0  ;;  %v739_v34 = vsel %vm733_vm13, %v726_v21, 920167782 }
  0xa6   :  { %v979_v52 = vadd.s32 4294967294, %v457_v55  ;;  %v734_v15 = vsel %vm730_vm11, %v714_v4, %v717_v26  ;;  %v740_v11 = vsel %vm732_vm12, %v723_v29, %v739_v34  ;;  %v742_v38 = vsel %vm730_vm11, %v720_v19, %v723_v29 }
  0xa7   :  { %v736_v57 = vsel %vm732_vm12, %v720_v19, %v735_v45  ;;  %v741_v22 = vsel %vm731_vm14, %v738_v54, %v740_v11  ;;  %v743_v58 = vsel %vm733_vm13, %v729_v51, 1326507024  ;;  %v993_v10 = vadd.s32 4294967169, %v805_v9 }
  0xa8   :  { %vm984_vm15 = vcmp.lt.s32.totalorder %v983_v37, 0  ;;  %v744_v43 = vsel %vm732_vm12, %v726_v21, %v743_v58  ;;  %v1659_v0 = vmul.u32.u64.low %v746_v56, %v741_v22  ;;  %v1660_v41 = vmul.u32.u64.high %v746_v56, %v741_v22, %v1659_v0 }
  0xa9   :  { %v359_v26 = vshll.u32 %v1519_v63, %v1623_v49  ;;  %v987_v55 = vadd.s32 4294967294, %v663_v16  ;;  %v745_v4 = vsel %vm731_vm14, %v742_v38, %v744_v43  ;;  %v811_v29 = vadd.s32 1, %v993_v10 }
  0xaa   :  { %v360_v19 = vshrl.u32 %v1611_v59, %v358_v13  ;;  %v364_v45 = vshll.u32 %v363_v46, 23  ;;  %vm980_vm0 = vcmp.lt.s32.totalorder %v979_v52, 0  ;;  %v737_v51 = vsel %vm731_vm14, %v734_v15, %v736_v57 }
  0xab   :  { %v563_v9 = vsel %vm984_vm15, 0, %v983_v37  ;;  %v1668_v54 = vmul.u32.u64.low %v746_v56, %v745_v4  ;;  %v1669_v21 = vmul.u32.u64.high %v746_v56, %v745_v4, %v1668_v54  ;;  %vm812_vm1 = vcmp.gt.s32.totalorder %v811_v29, 0 }
  0xac   :  { %1042 = vcosq.f32 %v1616_v31  ;;  %v1675_v63 = vsel %vm185_vm10, %v267_v24, %v1621_v1  ;;  %v756_v49 = vadd.s32 1, %v1660_v41  ;;  %v813_v16 = vsel %vm812_vm1, %v811_v29, 0 }
  0xad   :  { %vm988_vm2 = vcmp.lt.s32.totalorder %v987_v55, 0  ;;  %v753_v59 = vmul.u32 %v746_v56, %v737_v51  ;;  %v1978_v44 = vand.u32 2147483647, %v1604_v62  ;;  %v815_v13 = vand.u32 31, %v813_v16 }
  0xae   :  { %v1679_v37 = vsel %vm980_vm0, 0, %v979_v52  ;;  %v548_v46 = vadd.s32 %v1495_v23, %v1493_v39  ;;  %v564_v34 = vsub.s32 32, %v563_v9  ;;  %v568_v15 = vsub.s32 4294967266, %v563_v9 }
  0xaf   :  { %v1683_v11 = vor.u32 %v360_v19, %v359_v26  ;;  %v1685_v38 = vor.u32 4788187, %v364_v45  ;;  %v1689_v1 = vadd.s32 %v1460_v3, %v1467_v12  ;;  %vm755_vm3 = vc.u32 %v1669_v21, %v1659_v0 }
  0xb0   :  { %v666_v56 = vsel %vm988_vm2, 0, %v987_v55  ;;  %v757_v52 = vsel %vm755_vm3, %v756_v49, %v1660_v41  ;;  %v816_v57 = vsub.s32 32, %v815_v13  ;;  %v465_v39 = vsub.s32 4294967266, %v1679_v37 }
  0xb1   :  { %v651_v23 = vadd.s32 %v1561_v53, %v1575_v33  ;;  %v758_v22 = vadd.s32 %v757_v52, %v753_v59  ;;  %v808_v58 = vand.u32 8388607, %v1978_v44  ;;  %v565_v3 = vshll.u32 %v1583_v8, %v563_v9 }
  0xb2   :  { %v566_v12 = vshrl.u32 %v548_v46, %v564_v34  ;;  %v569_v10 = vadd.s32 127, %v568_v15  ;;  %v667_v43 = vsub.s32 32, %v666_v56  ;;  %v671_v26 = vsub.s32 4294967266, %v666_v56 }
  0xb3   :  { %v759_v4 = vadd.s32 536870912, %v758_v22  ;;  %v814_v55 = vshrl.u32 %v813_v16, 5  ;;  %v818_v41 = vshll.u32 %v1141_v30, %v815_v13  ;;  %v819_v29 = vshrl.u32 %v1142_v32, %v816_v57 }
  0xb4   :  { %v821_v19 = vshll.u32 %v1142_v32, %v815_v13  ;;  %v822_v53 = vshrl.u32 %v1143_v35, %v816_v57  ;;  %v824_v33 = vshll.u32 %v1143_v35, %v815_v13  ;;  %v825_v8 = vshrl.u32 %v1138_v20, %v816_v57 }
  0xb5   :  { %v1706_v45 = vshrl.u32 %v759_v4, 30  ;;  %v827_v51 = vshll.u32 %v1138_v20, %v815_v13  ;;  %v828_v9 = vshrl.u32 %v1139_v25, %v816_v57  ;;  %v1713_v49 = vor.u32 %v566_v12, %v565_v3 }
  0xb6   :  { %v1711_v54 = vpop.eup %1042  ;;  %v570_v16 = vshll.u32 %v569_v10, 23  ;;  %v830_v59 = vshll.u32 %v1139_v25, %v815_v13  ;;  %v831_v32 = vshrl.u32 %v1140_v28, %v816_v57  ;;  %v668_v46 = vshll.u32 %v1635_v48, %v666_v56 }
  0xb7   :  { %v672_v35 = vadd.s32 127, %v671_v26  ;;  %v761_v34 = vshll.u32 %v1706_v45, 30  ;;  %v809_v15 = vor.u32 8388608, %v808_v58  ;;  %v669_v52 = vshrl.u32 %v651_v23, %v667_v43 }
  0xb8   :  { %v820_v4 = vor.u32 %v819_v29, %v818_v41  ;;  %v823_v20 = vor.u32 %v822_v53, %v821_v19  ;;  %v829_v44 = vor.u32 %v828_v9, %v827_v51  ;;  %v826_v24 = vor.u32 %v825_v8, %v824_v33 }
  0xb9   :  { %v1719_v14 = vsub.s32 %v758_v22, %v761_v34  ;;  %vm833_vm4 = vcmp.lt.s32.totalorder %v814_v55, 1  ;;  %vm836_vm5 = vcmp.lt.s32.totalorder %v814_v55, 4  ;;  %v466_v3 = vadd.s32 127, %v465_v39 }
  0xba   :  { %v571_v12 = vor.u32 4788187, %v570_v16  ;;  %v817_v25 = vshrl.u32 %v1141_v30, %v816_v57  ;;  %v832_v28 = vor.u32 %v831_v32, %v830_v59  ;;  %v673_v13 = vshll.u32 %v672_v35, 23 }
  0xbb   :  { %v764_v48 = vsub.s32 0, %v1719_v14  ;;  %vm835_vm6 = vcmp.lt.s32.totalorder %v814_v55, 3  ;;  %v838_v56 = vsel %vm836_vm5, %v826_v24, 2102212464  ;;  %vm834_vm7 = vcmp.lt.s32.totalorder %v814_v55, 2 }
  0xbc   :  { %v841_v23 = vsel %vm833_vm4, %v820_v4, %v823_v20  ;;  %v842_v22 = vsel %vm836_vm5, %v829_v44, 920167782  ;;  %v849_v58 = vshll.u32 %v809_v15, 8  ;;  %v1981_v10 = vand.u32 2147483647, %v1186_v7 }
  0xbd   :  { %v574_v30 = vcvt.s32.f32 %v1713_v49  ;;  %v670_v57 = vor.u32 %v669_v52, %v668_v46  ;;  %v990_v43 = vmin.u32 %v764_v48, %v1719_v14  ;;  %v845_v26 = vsel %vm833_vm4, %v823_v20, %v826_v24 }
  0xbe   :  { %vm1728_vm8 = vcmp.le.f32.partialorder %v1981_v10, 0.7853982  ;;  %v837_v41 = vsel %vm833_vm4, %v817_v25, %v820_v4  ;;  %v839_v29 = vsel %vm835_vm6, %v823_v20, %v838_v56  ;;  %v843_v19 = vsel %vm835_vm6, %v826_v24, %v842_v22 }
  0xbf   :  { %v846_v53 = vsel %vm836_vm5, %v832_v28, 1326507024  ;;  %v674_v33 = vor.u32 4788187, %v673_v13  ;;  %v766_v8 = vclz %v990_v43  ;;  %v844_v51 = vsel %vm834_vm7, %v841_v23, %v843_v19 }
  0xc0   :  { %v847_v9 = vsel %vm835_vm6, %v829_v44, %v846_v53  ;;  %v572_v49 = vand.u32 2147483647, %v571_v12  ;;  %v1742_v59 = vmul.u32.u64.low %v849_v58, %v844_v51  ;;  %v1743_v32 = vmul.u32.u64.high %v849_v58, %v844_v51, %v1742_v59 }
  0xc1   :  { %v848_v16 = vsel %vm834_vm7, %v845_v26, %v847_v9  ;;  %v991_v46 = vadd.s32 4294967294, %v766_v8  ;;  %v840_v35 = vsel %vm834_vm7, %v837_v41, %v839_v29  ;;  %v368_v15 = vcvt.s32.f32 %v1683_v11 }
  0xc2   :  { %v1747_v34 = vmul.u32.u64.low %v849_v58, %v848_v16  ;;  %v1748_v24 = vmul.u32.u64.high %v849_v58, %v848_v16, %v1747_v34  ;;  %v462_v52 = vshll.u32 %v1586_v61, %v1679_v37  ;;  %v1984_v44 = vsub.s32 32, %v1679_v37 }
  0xc3   :  { %v467_v20 = vshll.u32 %v466_v3, 23  ;;  %v675_v12 = vand.u32 2147483647, %v674_v33  ;;  %v677_v25 = vcvt.s32.f32 %v670_v57  ;;  %v754_v28 = vadd.s32 %v1659_v0, %v1669_v21 }
  0xc4   :  { %v463_v4 = vshrl.u32 %v1689_v1, %v1984_v44  ;;  %vm992_vm9 = vcmp.lt.s32.totalorder %v991_v46, 0  ;;  %v366_v55 = vand.u32 2147483647, %v1685_v38  ;;  %v856_v48 = vmul.u32 %v849_v58, %v840_v35 }
  0xc5   :  { %v769_v13 = vsel %vm992_vm9, 0, %v991_v46  ;;  %v859_v11 = vadd.s32 1, %v1743_v32  ;;  %vm288_vm11 = vcmp.lt.s32.totalorder %v1206_v47, 0  ;;  %v575_v61 = vmul.f32 %v574_v30, %v572_v49 }
  0xc6   :  { %v770_v56 = vsub.s32 32, %v769_v13  ;;  %v771_v37 = vshll.u32 %v1719_v14, %v769_v13  ;;  %v774_v1 = vsub.s32 4294967266, %v769_v13  ;;  %1044 = vsinq.f32 %v1616_v31 }
  0xc7   :  { %v464_v3 = vor.u32 %v463_v4, %v462_v52  ;;  %v468_v23 = vor.u32 4788187, %v467_v20  ;;  %vm858_vm12 = vc.u32 %v1748_v24, %v1742_v59  ;;  %v678_v0 = vmul.f32 %v677_v25, %v675_v12 }
  0xc8   :  { %v772_v21 = vshrl.u32 %v754_v28, %v770_v56  ;;  %v775_v38 = vadd.s32 127, %v774_v1  ;;  %v860_v22 = vsel %vm858_vm12, %v859_v11, %v1743_v32  ;;  %v1985_v58 = vsub.s32 4, %v1346_v5 }
  0xc9   :  { %v271_v14 = vsel %vm1728_vm8, %v1186_v7, %v1675_v63  ;;  %v1986_v31 = vand.u32 2147483647, %v1206_v47  ;;  %v369_v57 = vmul.f32 %v368_v15, %v366_v55  ;;  %v861_v43 = vadd.s32 %v860_v22, %v856_v48 }
  0xca   :  { %v270_v10 = vsel %vm185_vm10, %v1985_v58, %v1346_v5  ;;  %v372_v26 = vsub.s32 4, %v1479_v18  ;;  %v576_v41 = vxor.u32 2147483648, %v575_v61  ;;  %v773_v29 = vor.u32 %v772_v21, %v771_v37 }
  0xcb   :  { %vm1777_vm13 = vcmp.le.f32.partialorder %v1986_v31, 0.7853982  ;;  %v776_v19 = vshll.u32 %v775_v38, 23  ;;  %v469_v53 = vand.u32 2147483647, %v468_v23  ;;  %v471_v5 = vcvt.s32.f32 %v464_v3 }
  0xcc   :  { %vm494_vm10 = vcmp.lt.s32.totalorder %v1354_v17, 0  ;;  %v862_v33 = vadd.s32 536870912, %v861_v43  ;;  %1046 = vcosq.f32 %v271_v14  ;;  %v679_v63 = vxor.u32 2147483648, %v678_v0 }
  0xcd   :  { %v777_v8 = vor.u32 4788187, %v776_v19  ;;  %v780_v51 = vcvt.s32.f32 %v773_v29  ;;  %1048 = vsinq.f32 %v271_v14  ;;  %v370_v9 = vxor.u32 2147483648, %v369_v57 }
  0xce   :  { %vm597_vm14 = vcmp.lt.s32.totalorder %v1396_v60, 0  ;;  %v1784_v49 = vshrl.u32 %v862_v33, 30  ;;  %vm391_vm15 = vcmp.lt.s32.totalorder %v1279_v50, 0  ;;  %v1989_v16 = vand.u32 2147483647, %v1354_v17 }
  0xcf   :  { %v577_v46 = vsel %vm494_vm10, %v576_v41, %v575_v61  ;;  %v778_v35 = vand.u32 2147483647, %v777_v8  ;;  %v272_v34 = vsel %vm1728_vm8, 0, %v270_v10  ;;  %v373_v15 = vsel %vm288_vm11, %v372_v26, %v1479_v18 }
  0xd0   :  { %vm1789_vm0 = vcmp.le.f32.partialorder %v1989_v16, 0.7853982  ;;  %v1992_v52 = vand.u32 2147483647, %v1279_v50  ;;  %v472_v4 = vmul.f32 %v471_v5, %v469_v53  ;;  %v864_v20 = vshll.u32 %v1784_v49, 30  ;;  %v1045_v28 = vpop.eup %1044 }
  0xd1   :  { %vm175_vm2 = vcmp.eq.s32.totalorder %v1606_v27, 0  ;;  %v1995_v12 = vand.u32 2147483647, %v1396_v60  ;;  %v680_v18 = vsel %vm597_vm14, %v679_v63, %v678_v0  ;;  %v781_v25 = vmul.f32 %v780_v51, %v778_v35 }
  0xd2   :  { %vm1802_vm1 = vcmp.le.f32.partialorder %v1992_v52, 0.7853982  ;;  %vm178_vm4 = vcmp.eq.s32.totalorder %v1606_v27, 2  ;;  %v371_v55 = vsel %vm288_vm11, %v370_v9, %v369_v57  ;;  %v580_v13 = vsel %vm1789_vm0, %v1354_v17, %v577_v46 }
  0xd3   :  { %vm1810_vm3 = vcmp.le.f32.partialorder %v1995_v12, 0.7853982  ;;  %v1822_v48 = vsub.s32 %v861_v43, %v864_v20  ;;  %v1824_v11 = vand.u32 3, %v272_v34  ;;  %v375_v61 = vsel %vm1777_vm13, 0, %v373_v15 }
  0xd4   :  { %vm700_vm5 = vcmp.lt.s32.totalorder %v1423_v40, 0  ;;  %v782_v56 = vxor.u32 2147483648, %v781_v25  ;;  %v179_v37 = vxor.u32 2147483648, %v1711_v54  ;;  %v473_v1 = vxor.u32 2147483648, %v472_v4 }
  0xd5   :  { %v683_v3 = vsel %vm1810_vm3, %v1396_v60, %v680_v18  ;;  %v867_v23 = vsub.s32 0, %v1822_v48  ;;  %v176_v0 = vxor.u32 2147483648, %v1045_v28  ;;  %v374_v21 = vsel %vm1777_vm13, %v1206_v47, %v371_v55 }
  0xd6   :  { %v578_v38 = vsub.s32 4, %v1551_v2  ;;  %1050 = vcosq.f32 %v580_v13  ;;  %v1998_v22 = vand.u32 2147483647, %v1423_v40  ;;  %v783_v10 = vsel %vm700_vm5, %v782_v56, %v781_v25  ;;  %v1047_v31 = vpop.eup %1046 }
  0xd7   :  { %1052 = vsinq.f32 %v580_v13  ;;  %v994_v14 = vmin.u32 %v867_v23, %v1822_v48  ;;  %vm278_vm7 = vcmp.eq.s32.totalorder %v1824_v11, 0  ;;  %vm281_vm8 = vcmp.eq.s32.totalorder %v1824_v11, 2  ;;  %v1049_v57 = vpop.eup %1048 }
  0xd8   :  { %vm1840_vm6 = vcmp.le.f32.partialorder %v1998_v22, 0.7853982  ;;  %v475_v30 = vsub.s32 4, %v1554_v42  ;;  %1054 = vcosq.f32 %v683_v3  ;;  %vm174_vm9 = vcmp.lt.s32.totalorder %v1606_v27, 2 }
  0xd9   :  { %vm277_vm11 = vcmp.lt.s32.totalorder %v1824_v11, 2  ;;  %v474_v43 = vsel %vm391_vm15, %v473_v1, %v472_v4  ;;  %v681_v26 = vsub.s32 4, %v1619_v36  ;;  %1056 = vsinq.f32 %v683_v3 }
  0xda   :  { %v869_v41 = vclz %v994_v14  ;;  %v180_v29 = vsel %vm178_vm4, %v179_v37, %v1045_v28  ;;  %1058 = vcosq.f32 %v374_v21  ;;  %v1857_v19 = vand.u32 3, %v375_v61 }
  0xdb   :  { %v786_v53 = vsel %vm1840_vm6, %v1423_v40, %v783_v10  ;;  %v177_v5 = vsel %vm175_vm2, %v1711_v54, %v176_v0  ;;  %1060 = vsinq.f32 %v374_v21  ;;  %v579_v33 = vsel %vm494_vm10, %v578_v38, %v1551_v2 }
  0xdc   :  { %v995_v63 = vadd.s32 4294967294, %v869_v41  ;;  %v279_v8 = vxor.u32 2147483648, %v1049_v57  ;;  %v282_v51 = vxor.u32 2147483648, %v1047_v31  ;;  %v476_v9 = vsel %vm391_vm15, %v475_v30, %v1554_v42 }
  0xdd   :  { %v477_v16 = vsel %vm1802_vm1, %v1279_v50, %v474_v43  ;;  %v682_v54 = vsel %vm597_vm14, %v681_v26, %v1619_v36  ;;  %1062 = vcosq.f32 %v786_v53  ;;  %v857_v46 = vadd.s32 %v1742_v59, %v1748_v24 }
  0xde   :  { %vm996_vm12 = vcmp.lt.s32.totalorder %v995_v63, 0  ;;  %v581_v2 = vsel %vm1789_vm0, 0, %v579_v33  ;;  %v784_v35 = vsub.s32 4, %v1706_v45  ;;  %1064 = vsinq.f32 %v786_v53 }
  0xdf   :  { %v872_v42 = vsel %vm996_vm12, 0, %v995_v63  ;;  %1066 = vcosq.f32 %v477_v16  ;;  %v280_v36 = vsel %vm278_vm7, %v1047_v31, %v279_v8  ;;  %v283_v59 = vsel %vm281_vm8, %v282_v51, %v1049_v57 }
  0xe0   :  { %v873_v34 = vsub.s32 32, %v872_v42  ;;  %v874_v15 = vshll.u32 %v1822_v48, %v872_v42  ;;  %v877_v52 = vsub.s32 4294967266, %v872_v42  ;;  %v1051_v4 = vpop.eup %1050  ;;  %1068 = vsinq.f32 %v477_v16 }
  0xe1   :  { %v684_v24 = vsel %vm1810_vm3, 0, %v682_v54  ;;  %v1053_v32 = vpop.eup %1052  ;;  %v478_v20 = vsel %vm1802_vm1, 0, %v476_v9  ;;  %v585_v12 = vand.u32 3, %v581_v2  ;;  %v785_v55 = vsel %vm700_vm5, %v784_v35, %v1706_v45 }
  0xe2   :  { %v875_v18 = vshrl.u32 %v857_v46, %v873_v34  ;;  %v878_v25 = vadd.s32 127, %v877_v52  ;;  %v1055_v28 = vpop.eup %1054  ;;  %vm381_vm13 = vcmp.eq.s32.totalorder %v1857_v19, 0  ;;  %v688_v48 = vand.u32 3, %v684_v24 }
  0xe3   :  { %v1057_v13 = vpop.eup %1056  ;;  %v181_v37 = vsel %vm174_vm9, %v177_v5, %v180_v29  ;;  %v284_v44 = vsel %vm277_vm11, %v280_v36, %v283_v59  ;;  %vm384_vm10 = vcmp.eq.s32.totalorder %v1857_v19, 2  ;;  %v1900_v1 = vand.u32 3, %v478_v20 }
  0xe4   :  { %v876_v61 = vor.u32 %v875_v18, %v874_v15  ;;  %v879_v56 = vshll.u32 %v878_v25, 23  ;;  %v1059_v39 = vpop.eup %1058  ;;  %vm587_vm14 = vcmp.eq.s32.totalorder %v585_v12, 0  ;;  %v787_v45 = vsel %vm1840_vm6, 0, %v785_v55 }
  0xe5   :  { %v1061_v3 = vpop.eup %1060  ;;  %vm172_vm15 = vweird.f32 %v1184_v6  ;;  %vm275_vm0 = vweird.f32 %v1186_v7  ;;  %vm584_vm1 = vweird.f32 %v1354_v17  ;;  %v588_v27 = vxor.u32 2147483648, %v1053_v32 }
  0xe6   :  { %v880_v23 = vor.u32 4788187, %v879_v56  ;;  %v883_v0 = vcvt.s32.f32 %v876_v61  ;;  %v591_v11 = vxor.u32 2147483648, %v1051_v4  ;;  %v691_v21 = vxor.u32 2147483648, %v1057_v13 }
  0xe7   :  { %v694_v38 = vxor.u32 2147483648, %v1055_v28  ;;  %v1063_v22 = vpop.eup %1062  ;;  %vm590_vm3 = vcmp.eq.s32.totalorder %v585_v12, 2  ;;  %vm690_vm4 = vcmp.eq.s32.totalorder %v688_v48, 0  ;;  %vm693_vm5 = vcmp.eq.s32.totalorder %v688_v48, 2 }
  0xe8   :  { %v881_v58 = vand.u32 2147483647, %v880_v23  ;;  %v1065_v10 = vpop.eup %1064  ;;  %v382_v14 = vxor.u32 2147483648, %v1061_v3  ;;  %v385_v31 = vxor.u32 2147483648, %v1059_v39  ;;  %vm586_vm6 = vcmp.lt.s32.totalorder %v585_v12, 2 }
  0xe9   :  { %v791_v30 = vand.u32 3, %v787_v45  ;;  %v1067_v57 = vpop.eup %1066  ;;  %vm689_vm7 = vcmp.lt.s32.totalorder %v688_v48, 2  ;;  %v2001_v43 = vand.u32 2147483647, %v1604_v62  ;;  %vm803_vm9 = vcmp.lt.s32.totalorder %v1604_v62, 0 }
  0xea   :  { %v884_v41 = vmul.f32 %v883_v0, %v881_v58  ;;  %v1069_v29 = vpop.eup %1068  ;;  %v589_v53 = vsel %vm587_vm14, %v1051_v4, %v588_v27  ;;  %v592_v5 = vsel %vm590_vm3, %v591_v11, %v1053_v32  ;;  %v692_v33 = vsel %vm690_vm4, %v1055_v28, %v691_v21 }
  0xeb   :  { %vm1910_vm8 = vcmp.le.f32.partialorder %v2001_v43, 0.7853982  ;;  %v695_v63 = vsel %vm693_vm5, %v694_v38, %v1057_v13  ;;  %v794_v8 = vxor.u32 2147483648, %v1065_v10  ;;  %v797_v51 = vxor.u32 2147483648, %v1063_v22 }
  0xec   :  { %v885_v9 = vxor.u32 2147483648, %v884_v41  ;;  %v887_v16 = vsub.s32 4, %v1784_v49  ;;  %v386_v54 = vsel %vm384_vm10, %v385_v31, %v1061_v3  ;;  %vm687_vm11 = vweird.f32 %v1396_v60 }
  0xed   :  { %vm793_vm12 = vcmp.eq.s32.totalorder %v791_v30, 0  ;;  %vm796_vm2 = vcmp.eq.s32.totalorder %v791_v30, 2  ;;  %v383_v46 = vsel %vm381_vm13, %v1059_v39, %v382_v14  ;;  %v485_v2 = vxor.u32 2147483648, %v1069_v29 }
  0xee   :  { %v488_v35 = vxor.u32 2147483648, %v1067_v57  ;;  %v886_v42 = vsel %vm803_vm9, %v885_v9, %v884_v41  ;;  %v593_v34 = vsel %vm586_vm6, %v589_v53, %v592_v5  ;;  %v696_v15 = vsel %vm689_vm7, %v692_v33, %v695_v63 }
  0xef   :  { %vm792_vm14 = vcmp.lt.s32.totalorder %v791_v30, 2  ;;  %v889_v52 = vsel %vm1910_vm8, %v1604_v62, %v886_v42  ;;  %v795_v4 = vsel %vm793_vm12, %v1063_v22, %v794_v8  ;;  %v798_v36 = vsel %vm796_vm2, %v797_v51, %v1065_v10 }
  0xf0   :  { %v888_v59 = vsel %vm803_vm9, %v887_v16, %v1784_v49  ;;  %1070 = vcosq.f32 %v889_v52  ;;  %vm378_vm13 = vweird.f32 %v1206_v47  ;;  %vm484_vm10 = vcmp.eq.s32.totalorder %v1900_v1, 0 }
  0xf1   :  { %vm487_vm3 = vcmp.eq.s32.totalorder %v1900_v1, 2  ;;  %1072 = vsinq.f32 %v889_v52  ;;  %v182_v24 = vsel %vm172_vm15, nan, %v181_v37  ;;  %v285_v32 = vsel %vm275_vm0, nan, %v284_v44 }
  0xf2   :  { %v594_v20 = vsel %vm584_vm1, nan, %v593_v34  ;;  %v697_v49 = vsel %vm687_vm11, nan, %v696_v15  ;;  %vm2004_vm2 = vcmp.lt.s32.totalorder %v1857_v19, 2  ;;  %vm790_vm4 = vweird.f32 %v1423_v40 }
  0xf3   :  { %v387_v12 = vsel %vm2004_vm2, %v383_v46, %v386_v54  ;;  %v799_v18 = vsel %vm792_vm14, %v795_v4, %v798_v36  ;;  %v890_v6 = vsel %vm1910_vm8, 0, %v888_v59  ;;  %vm483_vm15 = vcmp.lt.s32.totalorder %v1900_v1, 2 }
  0xf4   :  { %v486_v7 = vsel %vm484_vm10, %v1067_v57, %v485_v2  ;;  %v489_v25 = vsel %vm487_vm3, %v488_v35, %v1069_v29  ;;  %v904_v28 = vsub.f32 1.0, %v182_v24  ;;  %v905_v17 = vsub.f32 1.0, %v285_v32 }
  0xf5   :  { %v908_v55 = vsub.f32 1.0, %v594_v20  ;;  %v909_v13 = vsub.f32 1.0, %v697_v49  ;;  %v388_v60 = vsel %vm378_vm13, nan, %v387_v12  ;;  %v800_v19 = vsel %vm790_vm4, nan, %v799_v18 }
  0xf6   :  { %v894_v48 = vand.u32 3, %v890_v6  ;;  %vm481_vm0 = vweird.f32 %v1279_v50  ;;  %v490_v40 = vsel %vm483_vm15, %v486_v7, %v489_v25  ;;  %v906_v61 = vsub.f32 1.0, %v388_v60 }
  0xf7   :  { %v910_v56 = vsub.f32 1.0, %v800_v19  ;;  %v916_v39 = vadd.f32 %v908_v55, %v904_v28  ;;  %v917_v37 = vadd.f32 %v909_v13, %v905_v17  ;;  %v491_v45 = vsel %vm481_vm0, nan, %v490_v40 }
  0xf8   :  { %vm899_vm1 = vcmp.eq.s32.totalorder %v894_v48, 2  ;;  %vm896_vm5 = vcmp.eq.s32.totalorder %v894_v48, 0  ;;  %vm895_vm6 = vcmp.lt.s32.totalorder %v894_v48, 2  ;;  %vm893_vm7 = vweird.f32 %v1604_v62 }
  0xf9   :  { %v918_v0 = vadd.f32 %v910_v56, %v906_v61  ;;  %v935_v27 = vadd.f32 %v917_v37, %v916_v39  ;;  %v907_v21 = vsub.f32 1.0, %v491_v45 }
  0xfa   :  { %v1071_v44 = vpop.eup %1070 }
  0xfb   :  { %v1073_v1 = vpop.eup %1072  ;;  %v900_v3 = vxor.u32 2147483648, %v1071_v44  ;;  %v936_v58 = vadd.f32 %v935_v27, %v918_v0 }
  0xfc   :  { %v897_v23 = vxor.u32 2147483648, %v1073_v1 }
  0xfd   :  { %v901_v47 = vsel %vm899_vm1, %v900_v3, %v1073_v1 }
  0xfe   :  { %v898_v11 = vsel %vm896_vm5, %v1071_v44, %v897_v23 }
  0xff   :  { %v902_v50 = vsel %vm895_vm6, %v898_v11, %v901_v47 }
 0x100   :  { %v903_v38 = vsel %vm893_vm7, nan, %v902_v50 }
 0x101   :  { %v911_v22 = vsub.f32 1.0, %v903_v38 }
 0x103   :  { %v919_v10 = vadd.f32 %v911_v22, %v907_v21 }
 0x105   :  { %v937_v14 = vadd.f32 %v936_v58, %v919_v10 }
 0x107   :  { %938 = vadd.xlane.f32.xlu0 %v937_v14 }
 0x194   :  { %v939_v31 = vpop.xlane.xlu0 %938 }
 0x195   :  { %v940_v30 = vrot.slane %v939_v31, 4 }
 0x197   :  { %v941_v57 = vadd.f32 %v940_v30, %v939_v31 }
 0x199   :  { %v942_v43 = vrot.slane %v941_v57, 2 }
 0x19b   :  { %v943_v26 = vadd.f32 %v942_v43, %v941_v57 }
 0x19d   :  { %v944_v41 = vrot.slane %v943_v26, 1 }
 0x19f   :  { %v945_v29 = vadd.f32 %v944_v41, %v943_v26 }
 0x1a1   :  { %1029 = vpush %v945_v29 }
 0x1d2   :  { %s1030_s1 = spop %1029 }
 0x1d3   :  { %s947_s6 = smul.f32 0.0002, %s1030_s1 }
 0x1d5   :  { %949 = sst [smem:[#allocation8]] %s947_s6 }
 0x1d6   :  { %1127 = shalt.err (!%p1124_p4)
}
 0x1d7   :  { %s1144_s14 = smov [#allocation8]  }
 0x1d8   :  { %957 = dma.smem_to_hbm %s1144_s14, 16, %s1971_s2, [#allocation5]  }
 0x1d9   :  { %1132 = dma.done.wait [#allocation5], 16  }
 0x1da   :  { %1133 = vsyncadd [#allocation5], 4294967280 }
 0x1db   :  { %961 = sfence }
 0x1dc   :  { %962 = vsyncpa [#allocation4], 1 }
 0x1dd   :  { %963 = vsyncpa [#allocation7], 1 }
 0x1de   :  { %964 = vsyncpa [#allocation5], 1 }

</bundles_post_ra>
